<compile_context>
chip_gen: v6e
topology: v6e:2x2x1
jax: 0.10.0
libtpu: 0.0.40
codegen_flags: <defaults>
</compile_context>

<pallas_src>
import numpy as np
import jax
import jax.numpy as jnp
from jax import lax
from jax.experimental import pallas as pl
from jax.experimental.pallas import tpu as pltpu


def _default_grid_steps(batch):
    """2 parallel grid steps on v7x (2 TensorCores/chip), otherwise 1."""
    try:
        kind = jax.devices()[0].device_kind.lower()
    except Exception:
        kind = ""
    if "v7" in kind and batch >= 2 and batch % 2 == 0:
        return 2
    return 1


def cmst_wrapper_forward(x_nchw, w_conv, w_cls, wq_mat, num_grid_steps=None):
    """Returns (model_output [B, Ncls], total_quantum_loss scalar)."""
    B, C, H, W = x_nchw.shape
    Cf = w_conv.shape[0]
    Ncls = w_cls.shape[0]
    Qc = wq_mat.shape[1]
    Hp, Wp = H + 2, W + 2
    KX = Wp * C                 # per-kernel-row contraction width          (72)
    KF = 3 * KX                 # fused contraction width (3 kernel rows)   (216)
    NF = W * Cf                 # conv feature-map lanes, layout (w, co)    (128)
    NOUT = Ncls + Qc            # fused classifier + quantum projection cols (10)
    LANES = 128
    inv_hw = 1.0 / float(H * W)

    n_steps = _default_grid_steps(B) if num_grid_steps is None else int(num_grid_steps)
    if B % n_steps != 0:
        n_steps = 1
    Bblk = B // n_steps
    SUBL = ((Bblk + 7) // 8) * 8    # sublane-padded rows of the per-step output tile

    # ---- wrapper glue: weight prep + fused-K LHS slab ----------------------------
    # Padded NHWC slab [B, H+2, (W+2)*C]; the fused LHS concatenates the three
    # row-shifted windows along K so the kernel's 3x3 conv is ONE matmul.
    x_nhwc = jnp.transpose(x_nchw, (0, 2, 3, 1))
    x_slab = jnp.pad(x_nhwc, ((0, 0), (1, 1), (1, 1), (0, 0))).reshape(B, Hp, KX)
    lhs = jnp.concatenate([x_slab[:, dh:dh + H, :] for dh in range(3)], axis=-1)
    lhs = lhs.reshape(B * H, KF).astype(jnp.bfloat16)            # [B*H, 3*(W+2)*C]

    # Banded conv weights per kernel row dh, fused along K:
    #   wband[dh*KX + p*C+ci, w*Cf+co] = w_conv[co, ci, dh, p-w] if 0 <= p-w < 3 else 0
    place = (np.arange(Wp)[None, :, None]
             == np.arange(3)[:, None, None] + np.arange(W)[None, None, :])
    place = jnp.asarray(place, jnp.float32)                      # [3(dw), Wp, W]
    wband = jnp.einsum('kpw,oihk->hpiwo', place, w_conv)         # [3, Wp, C, W, Cf]
    wband = wband.reshape(KF, NF).astype(jnp.bfloat16)           # [3*(W+2)*C, W*Cf]

    # Fused tail weight [W*Cf, Ncls+Qc]: [classifier | quantum_projection] tiled over
    # the width positions folds the width half of the global average pool into the
    # same matmul; 1/(H*W) is folded in too.
    wcq = jnp.concatenate([jnp.transpose(w_cls[:, :, 0, 0]), wq_mat], axis=1)  # [Cf, NOUT]
    wtail = (jnp.tile(wcq, (W, 1)) * inv_hw).astype(jnp.bfloat16)              # [NF, NOUT]

    # ---- kernel (one grid step per batch block) ----------------------------------
    def kernel(lhs_ref, wband_ref, wtail_ref, out_ref):
        # base_model.features: 3x3 SAME conv as ONE fused banded bf16 matmul + ReLU.
        feat = jnp.dot(lhs_ref[...], wband_ref[...],
                       preferred_element_type=jnp.float32)       # [Bblk*H, W*Cf]
        feat = jnp.maximum(feat, 0.0)
        # base_model.avgpool: height reduction here (sublane sum); width reduction and
        # 1/(H*W) live in wtail, so one tail matmul yields [logits | quantum_state].
        pooled = jnp.sum(feat.reshape(Bblk, H, NF), axis=1)      # [Bblk, W*Cf] f32
        outs = jnp.dot(pooled.astype(jnp.bfloat16), wtail_ref[...],
                       preferred_element_type=jnp.float32)       # [Bblk, Ncls+Qc]
        logits = outs[:, :Ncls]

        # CMST_Neural_Adapter: density-matrix entries + metric-tensor determinant.
        a = jax.nn.sigmoid(outs[:, Ncls:Ncls + 1])               # rho[0,0]
        b = 1.0 - a                                              # rho[1,1] = coherence
        c = jnp.tanh(outs[:, Ncls + 1:Ncls + 2]) * jnp.sqrt(a * b)   # rho[0,1] (real)
        dc = b - 0.5
        de = jnp.abs(c) - 0.25
        # == (dc^2+1e-6)(de^2+1e-6) - (dc*de)^2 with the exact cancellation removed.
        det_g = 1e-6 * (dc * dc + de * de) + 1e-12
        qterm = jnp.maximum(det_g + 1e-6, 0.0)                   # relu(det_g + eps)

        # Single lane/sublane-dense (SUBL, 128) store: [logits | qterm | zeros].
        row = jnp.concatenate(
            [logits, qterm, jnp.zeros((Bblk, LANES - (Ncls + 1)), jnp.float32)], axis=1)
        if SUBL > Bblk:
            row = jnp.concatenate(
                [row, jnp.zeros((SUBL - Bblk, LANES), jnp.float32)], axis=0)
        out_ref[...] = row

    out = pl.pallas_call(
        kernel,
        out_shape=jax.ShapeDtypeStruct((n_steps, SUBL, LANES), jnp.float32),
        grid=(n_steps,),
        in_specs=[
            pl.BlockSpec((Bblk * H, KF), lambda i: (i, 0)),   # fused-K input rows
            pl.BlockSpec((KF, NF), lambda i: (0, 0)),         # banded conv weights
            pl.BlockSpec((NF, NOUT), lambda i: (0, 0)),       # fused tail weights
        ],
        out_specs=pl.BlockSpec((None, SUBL, LANES), lambda i: (i, 0, 0)),
        compiler_params=pltpu.CompilerParams(
            dimension_semantics=("parallel",)),               # batch blocks across TCs
        cost_estimate=pl.CostEstimate(
            flops=2 * B * H * KF * NF + 2 * B * NF * NOUT,
            transcendentals=4 * B,
            bytes_accessed=(lhs.size * 2 + wband.size * 2 + wtail.size * 2
                            + n_steps * SUBL * LANES * 4)),
    )(lhs, wband, wtail)

    rows = out[:, :Bblk, :].reshape(n_steps * Bblk, LANES)    # [B, 128]
    logits = rows[:, :Ncls]
    total_quantum_loss = 0.03 * jnp.mean(rows[:, Ncls])
    return logits, total_quantum_loss


if __name__ == "__main__":
    B, C_in, H, W = 2, 4, 16, 16
    Cf, Ncls, Qc = 8, 8, 2

    key = jax.random.PRNGKey(0)
    k1, k2, k3, k4 = jax.random.split(key, 4)
    w_conv = 0.3 * jax.random.normal(k1, (Cf, C_in, 3, 3), jnp.float32)    # features conv
    w_cls = 0.3 * jax.random.normal(k2, (Ncls, Cf, 1, 1), jnp.float32)     # classifier 1x1
    # nn.init.orthogonal_ equivalent: orthonormal columns via QR (deterministic)
    wq_mat, _ = jnp.linalg.qr(jax.random.normal(k3, (Cf, Qc), jnp.float32))  # [Cf, 2]
    x = jax.random.normal(k4, (B, C_in, H, W), jnp.float32)

    logits, qloss = jax.jit(cmst_wrapper_forward)(x, w_conv, w_cls, wq_mat)
    jax.block_until_ready((logits, qloss))

    # pure-JAX f32 reference for correctness check
    feat = jax.nn.relu(lax.conv_general_dilated(
        x, w_conv, (1, 1), 'SAME', dimension_numbers=('NCHW', 'OIHW', 'NCHW')))
    pooled = feat.mean(axis=(2, 3))
    logits_ref = pooled @ jnp.transpose(w_cls[:, :, 0, 0])
    sv = pooled @ wq_mat
    a = jax.nn.sigmoid(sv[:, 0]); b = 1.0 - a
    c = jnp.tanh(sv[:, 1]) * jnp.sqrt(a * b)
    dc = b - 0.5; de = jnp.abs(c) - 0.25
    det_g = (dc * dc + 1e-6) * (de * de + 1e-6) - (dc * de) ** 2
    loss_ref = 0.03 * jnp.mean(jax.nn.relu(det_g + 1e-6))

    # tolerances admit the bf16 MXU operands (review-requested) vs the f32 reference;
    # the 1e-6 epsilon floor inside relu(det_g + eps) keeps qloss well conditioned.
    np.testing.assert_allclose(np.asarray(logits), np.asarray(logits_ref),
                               rtol=2e-2, atol=1e-2)
    np.testing.assert_allclose(float(qloss), float(loss_ref), rtol=2e-2, atol=1e-9)
    print("KERNEL_OK")
</pallas_src>

<mosaic_0001>
module attributes {stable_mosaic.version = 11 : i64} {
  func.func @kernel(%arg0: i32, %arg1: memref<32x216xbf16, #tpu.memory_space<vmem>>, %arg2: memref<216x128xbf16, #tpu.memory_space<vmem>>, %arg3: memref<128x10xbf16, #tpu.memory_space<vmem>>, %arg4: memref<1x8x128xf32, #tpu.memory_space<vmem>>) attributes {dimension_semantics = [#tpu.dimension_semantics<parallel>], iteration_bounds = array<i64: 1>, scalar_prefetch = 0 : i64, scratch_operands = 0 : i64, tpu.core_type = #tpu.core_type<tc>, window_params = [{transform_indices = @transform_0, window_bounds = array<i64: 32, 216>}, {pipeline_mode = #tpu.pipeline_mode<synchronous>, transform_indices = @transform_1, window_bounds = array<i64: 216, 128>}, {pipeline_mode = #tpu.pipeline_mode<synchronous>, transform_indices = @transform_2, window_bounds = array<i64: 128, 10>}, {transform_indices = @transform_3, window_bounds = array<i64: 1, 8, 128>}]} {
    %c0 = arith.constant 0 : index
    %c0_0 = arith.constant 0 : index
    %0 = vector.load %arg1[%c0, %c0_0] : memref<32x216xbf16, #tpu.memory_space<vmem>>, vector<32x216xbf16>
    %c0_1 = arith.constant 0 : index
    %c0_2 = arith.constant 0 : index
    %1 = vector.load %arg2[%c0_1, %c0_2] : memref<216x128xbf16, #tpu.memory_space<vmem>>, vector<216x128xbf16>
    %cst = arith.constant dense<0.000000e+00> : vector<32x128xf32>
    %2 = tpu.matmul %0, %1, %cst {dimension_numbers = #tpu.dot_dimension_numbers<[1], [0], [0], [1], [0, 0, 1, 1], [], []>} : vector<32x216xbf16>, vector<216x128xbf16>, vector<32x128xf32> -> vector<32x128xf32>
    %cst_3 = arith.constant 0.000000e+00 : f32
    %3 = vector.broadcast %cst_3 : f32 to vector<32x128xf32>
    %4 = arith.maximumf %2, %3 : vector<32x128xf32>
    %5 = vector.shape_cast %4 : vector<32x128xf32> to vector<2x16x128xf32>
    %cst_4 = arith.constant dense<0.000000e+00> : vector<2x128xf32>
    %6 = vector.multi_reduction <add>, %5, %cst_4 [1] : vector<2x16x128xf32> to vector<2x128xf32>
    %7 = arith.truncf %6 : vector<2x128xf32> to vector<2x128xbf16>
    %c0_5 = arith.constant 0 : index
    %c0_6 = arith.constant 0 : index
    %8 = vector.load %arg3[%c0_5, %c0_6] : memref<128x10xbf16, #tpu.memory_space<vmem>>, vector<128x10xbf16>
    %cst_7 = arith.constant dense<0.000000e+00> : vector<2x10xf32>
    %9 = tpu.matmul %7, %8, %cst_7 {dimension_numbers = #tpu.dot_dimension_numbers<[1], [0], [0], [1], [0, 0, 1, 1], [], []>} : vector<2x128xbf16>, vector<128x10xbf16>, vector<2x10xf32> -> vector<2x10xf32>
    %10 = vector.extract_strided_slice %9 {offsets = [0, 0], sizes = [2, 8], strides = [1, 1]} : vector<2x10xf32> to vector<2x8xf32>
    %11 = vector.extract_strided_slice %9 {offsets = [0, 8], sizes = [2, 1], strides = [1, 1]} : vector<2x10xf32> to vector<2x1xf32>
    %12 = arith.negf %11 : vector<2x1xf32>
    %13 = math.exp %12 : vector<2x1xf32>
    %cst_8 = arith.constant 1.000000e+00 : f32
    %14 = vector.broadcast %cst_8 : f32 to vector<2x1xf32>
    %15 = arith.addf %14, %13 : vector<2x1xf32>
    %16 = arith.divf %14, %15 : vector<2x1xf32>
    %cst_9 = arith.constant 1.000000e+00 : f32
    %17 = vector.broadcast %cst_9 : f32 to vector<2x1xf32>
    %18 = arith.subf %17, %16 : vector<2x1xf32>
    %19 = vector.extract_strided_slice %9 {offsets = [0, 9], sizes = [2, 1], strides = [1, 1]} : vector<2x10xf32> to vector<2x1xf32>
    %20 = math.tanh %19 : vector<2x1xf32>
    %21 = arith.mulf %16, %18 : vector<2x1xf32>
    %22 = math.sqrt %21 : vector<2x1xf32>
    %23 = arith.mulf %20, %22 : vector<2x1xf32>
    %cst_10 = arith.constant 5.000000e-01 : f32
    %24 = vector.broadcast %cst_10 : f32 to vector<2x1xf32>
    %25 = arith.subf %18, %24 : vector<2x1xf32>
    %26 = math.absf %23 : vector<2x1xf32>
    %cst_11 = arith.constant 2.500000e-01 : f32
    %27 = vector.broadcast %cst_11 : f32 to vector<2x1xf32>
    %28 = arith.subf %26, %27 : vector<2x1xf32>
    %29 = arith.mulf %25, %25 : vector<2x1xf32>
    %30 = arith.mulf %28, %28 : vector<2x1xf32>
    %31 = arith.addf %29, %30 : vector<2x1xf32>
    %cst_12 = arith.constant 9.99999997E-7 : f32
    %32 = vector.broadcast %cst_12 : f32 to vector<2x1xf32>
    %33 = arith.mulf %32, %31 : vector<2x1xf32>
    %cst_13 = arith.constant 9.99999996E-13 : f32
    %34 = vector.broadcast %cst_13 : f32 to vector<2x1xf32>
    %35 = arith.addf %33, %34 : vector<2x1xf32>
    %cst_14 = arith.constant 9.99999997E-7 : f32
    %36 = vector.broadcast %cst_14 : f32 to vector<2x1xf32>
    %37 = arith.addf %35, %36 : vector<2x1xf32>
    %cst_15 = arith.constant 0.000000e+00 : f32
    %38 = vector.broadcast %cst_15 : f32 to vector<2x1xf32>
    %39 = arith.maximumf %37, %38 : vector<2x1xf32>
    %cst_16 = arith.constant 0.000000e+00 : f32
    %40 = vector.broadcast %cst_16 : f32 to vector<2x119xf32>
    %41 = tpu.concatenate %10, %39, %40 in 1 : vector<2x8xf32>, vector<2x1xf32>, vector<2x119xf32> -> vector<2x128xf32>
    %cst_17 = arith.constant 0.000000e+00 : f32
    %42 = vector.broadcast %cst_17 : f32 to vector<6x128xf32>
    %43 = tpu.concatenate %41, %42 in 0 : vector<2x128xf32>, vector<6x128xf32> -> vector<8x128xf32>
    %c0_18 = arith.constant 0 : index
    %c0_19 = arith.constant 0 : index
    %c0_20 = arith.constant 0 : index
    %44 = vector.load %arg4[%c0_18, %c0_19, %c0_20] : memref<1x8x128xf32, #tpu.memory_space<vmem>>, vector<1x8x128xf32>
    %45 = vector.shape_cast %44 : vector<1x8x128xf32> to vector<8x128xf32>
    %46 = vector.shape_cast %43 : vector<8x128xf32> to vector<1x8x128xf32>
    tpu.vector_store %arg4[%c0_18, %c0_19, %c0_20], %46 {strides = array<i32>} : memref<1x8x128xf32, #tpu.memory_space<vmem>>, vector<1x8x128xf32>,
    return
  }
  func.func @transform_0(%arg0: i32) -> (i32, i32) {
    %c0_i32 = arith.constant 0 : i32
    %c0_i32_0 = arith.constant 0 : i32
    return %arg0, %c0_i32 : i32, i32
  }
  func.func @transform_1(%arg0: i32) -> (i32, i32) {
    %c0_i32 = arith.constant 0 : i32
    %c0_i32_0 = arith.constant 0 : i32
    %c0_i32_1 = arith.constant 0 : i32
    return %c0_i32, %c0_i32_0 : i32, i32
  }
  func.func @transform_2(%arg0: i32) -> (i32, i32) {
    %c0_i32 = arith.constant 0 : i32
    %c0_i32_0 = arith.constant 0 : i32
    %c0_i32_1 = arith.constant 0 : i32
    return %c0_i32, %c0_i32_0 : i32, i32
  }
  func.func @transform_3(%arg0: i32) -> (i32, i32, i32) {
    %c0_i32 = arith.constant 0 : i32
    %c0_i32_0 = arith.constant 0 : i32
    %c0_i32_1 = arith.constant 0 : i32
    return %arg0, %c0_i32, %c0_i32_0 : i32, i32, i32
  }
}

</mosaic_0001>

<bundles_post_ra>
// kernel: cmst_wrapper_forward.1
= control target key start
LH: loop header
LB: loop body
LE: loop exit
PB: predicated region body
PF: predicated region fallthrough
CT: control target
= control target key end

     0   :  { %v484_v0 = vmov 0   ;;  %vm145_vm0 = vcmask 719872   ;;  %vm152_vm1 = vcmask 1043456   ;;  %v485_v21 = vmov 0.0   ;;  %s488_s8 = smov 127   ;;  %s592_s1 = inlined_call_operand.vmem [shape: bf16[216,128], index: 1, kind: input, shape index: {}]   ;;  %s593_s0 = inlined_call_operand.vmem [shape: bf16[32,216], index: 0, kind: input, shape index: {}]   ;;  %s594_s2 = inlined_call_operand.vmem [shape: bf16[128,10], index: 2, kind: input, shape index: {}]   ;;  %s595_s3 = inlined_call_operand.vmem [shape: f32[1,8,128], index: 3, kind: output, shape index: {}]  }
   0x1   :  { %156 = vmatprep.subr.bf16.mxu0 %v484_v0  ;;  %v448_v1 = vld [vmem:[%s592_s1 + $0x38] sm:$0xff]   ;;  %v449_v2 = vld [vmem:[%s592_s1 + $0x30] sm:$0xff]   ;;  %v450_v3 = vld [vmem:[%s592_s1 + $0x28] sm:$0xff]   ;;  %423 = vmatprep.subr.bf16.mxu1 %v485_v21  ;;  %vm486_vm2 = vmmov 0   ;;  %vm245_vm3 = vcmask 1041409   ;;  %vm372_vm6 = vcmask 64512  }
   0x2   :  { %157 = vmatpush1.bf16.msra.mxu0 %v448_v1  ;;  %v451_v4 = vld [vmem:[%s592_s1 + $0x20] sm:$0xff]   ;;  %v452_v5 = vld [vmem:[%s592_s1 + $0x18] sm:$0xff]   ;;  %v453_v7 = vld [vmem:[%s592_s1 + $0x10] sm:$0xff]   ;;  %439 = vmatprep.mubr.msk.bf16.mxu1 %vm486_vm2, %v485_v21  ;;  %vm374_vm7 = vcmask 72704   ;;  %vm376_vm8 = vcmask 1041408  }
   0x3   :  { %158 = vmatprep.subr.bf16.mxu0 %v484_v0  ;;  %v464_v6 = vld [vmem:[%s593_s0 + $0x4] ss:$8 sps:$4 sm:$0xff]   ;;  %v456_v10 = vld [vmem:[%s592_s1 + $0x68] ss:$0 sps:$4 sm:$0xff]   ;;  %v458_v13 = vld [vmem:[%s592_s1 + $0x58] sm:$0xff]  }
   0x4   :  { %401 = vmatprep.mubr.msk.bf16.mxu0 %vm145_vm0, %v464_v6  ;;  %v454_v8 = vld [vmem:[%s592_s1 + $0x8] sm:$0xff]   ;;  %v455_v9 = vld [vmem:[%s592_s1] sm:$0xff]   ;;  %v154_v11 = vsel %vm152_vm1, %v456_v10, 0  ;;  %v459_v14 = vld [vmem:[%s592_s1 + $0x50] sm:$0xff]  }
   0x5   :  { %v457_v12 = vld [vmem:[%s592_s1 + $0x60] sm:$0xff]   ;;  %v460_v15 = vld [vmem:[%s592_s1 + $0x48] sm:$0xff]   ;;  %v465_v18 = vld [vmem:[%s593_s0 + $0x14] ss:$8 sps:$4 sm:$0xff]  }
   0x6   :  { %159 = vmatpush1.bf16.msra.mxu0 %v449_v2  ;;  %v461_v16 = vld [vmem:[%s592_s1 + $0x40] sm:$0xff]   ;;  %v467_v19 = vld [vmem:[%s593_s0 + $0x10] ss:$8 sps:$4 sm:$0xff]   ;;  %v470_v23 = vld [vmem:[%s594_s2 + $0x28] sm:$0xff]  }
   0x7   :  { %160 = vmatprep.subr.bf16.mxu0 %v484_v0  ;;  %v462_v17 = vld [vmem:[%s593_s0] ss:$8 sps:$4 sm:$0xff]   ;;  %v468_v20 = vld [vmem:[%s594_s2 + $0x38] sm:$0xff]   ;;  %v469_v22 = vld [vmem:[%s594_s2 + $0x30] sm:$0xff]  }
   0x8   :  { %424 = vmatpush3.bf16.msra.mxu1 %v468_v20  ;;  %v471_v24 = vld [vmem:[%s594_s2 + $0x20] sm:$0xff]   ;;  %v472_v25 = vld [vmem:[%s594_s2 + $0x18] sm:$0xff]   ;;  %v473_v26 = vld [vmem:[%s594_s2 + $0x10] sm:$0xff]  }
   0x9   :  { %425 = vmatprep.subr.bf16.mxu1 %v485_v21  ;;  %v474_v27 = vld [vmem:[%s594_s2 + $0x8] sm:$0xff]   ;;  %v475_v28 = vld [vmem:[%s594_s2] sm:$0xff]   ;;  %s487_s2 = smov 1  }
   0xa   :  { %161 = vmatpush1.bf16.msra.mxu0 %v450_v3 }
   0xb   :  { %162 = vmatprep.subr.bf16.mxu0 %v484_v0 }
   0xc   :  { %426 = vmatpush3.bf16.msra.mxu1 %v469_v22 }
   0xd   :  { %427 = vmatprep.subr.bf16.mxu1 %v485_v21 }
   0xe   :  { %163 = vmatpush1.bf16.msra.mxu0 %v451_v4 }
   0xf   :  { %164 = vmatprep.subr.bf16.mxu0 %v484_v0 }
  0x10   :  { %428 = vmatpush3.bf16.msra.mxu1 %v470_v23 }
  0x11   :  { %429 = vmatprep.subr.bf16.mxu1 %v485_v21 }
  0x12   :  { %165 = vmatpush1.bf16.msra.mxu0 %v452_v5 }
  0x13   :  { %166 = vmatprep.subr.bf16.mxu0 %v484_v0 }
  0x14   :  { %430 = vmatpush3.bf16.msra.mxu1 %v471_v24 }
  0x15   :  { %431 = vmatprep.subr.bf16.mxu1 %v485_v21 }
  0x16   :  { %167 = vmatpush1.bf16.msra.mxu0 %v453_v7 }
  0x17   :  { %168 = vmatprep.subr.bf16.mxu0 %v484_v0 }
  0x18   :  { %432 = vmatpush3.bf16.msra.mxu1 %v472_v25 }
  0x19   :  { %433 = vmatprep.subr.bf16.mxu1 %v485_v21 }
  0x1a   :  { %169 = vmatpush1.bf16.msra.mxu0 %v454_v8 }
  0x1b   :  { %170 = vmatprep.subr.bf16.mxu0 %v484_v0 }
  0x1c   :  { %434 = vmatpush3.bf16.msra.mxu1 %v473_v26 }
  0x1d   :  { %435 = vmatprep.subr.bf16.mxu1 %v485_v21 }
  0x1e   :  { %171 = vmatpush1.bf16.msra.mxu0 %v455_v9 }
  0x1f   :  { %176 = vmatprep.subr.bf16.mxu0 %v484_v0 }
  0x20   :  { %436 = vmatpush3.bf16.msra.mxu1 %v474_v27 }
  0x21   :  { %437 = vmatprep.subr.bf16.mxu1 %v485_v21 }
  0x22   :  { %177 = vmatpush2.bf16.msra.mxu0 %v154_v11 }
  0x23   :  { %178 = vmatprep.subr.bf16.mxu0 %v484_v0 }
  0x24   :  { %438 = vmatpush3.bf16.msra.mxu1 %v475_v28 }
  0x26   :  { %179 = vmatpush2.bf16.msra.mxu0 %v457_v12 }
  0x27   :  { %180 = vmatprep.subr.bf16.mxu0 %v484_v0 }
  0x2a   :  { %181 = vmatpush2.bf16.msra.mxu0 %v458_v13 }
  0x2b   :  { %182 = vmatprep.subr.bf16.mxu0 %v484_v0 }
  0x2e   :  { %183 = vmatpush2.bf16.msra.mxu0 %v459_v14 }
  0x2f   :  { %184 = vmatprep.subr.bf16.mxu0 %v484_v0 }
  0x32   :  { %185 = vmatpush2.bf16.msra.mxu0 %v460_v15 }
  0x33   :  { %186 = vmatprep.subr.bf16.mxu0 %v484_v0 }
  0x36   :  { %187 = vmatpush2.bf16.msra.mxu0 %v461_v16 }
  0x39   :  { %189 = vmatmul.mubr.bf16.vlgmr.msra.gmra.mxu0 %v462_v17 }
  0x3a   :  { %402 = vmatprep.mubr.msk.bf16.mxu0 %vm145_vm0, %v465_v18 }
  0x41   :  { %197 = vmatmul.mubr.bf16.gmra.mxu0 %v467_v19 }
  0xf9   :  { %v190_v29 = vpop.f32.mrf.mxu0 }
  0xfa   :  { %v205_v32 = vmax.f32 %v190_v29, 0.0 }
  0xfb   :  { %v192_v30 = vpop.f32.mrf.mxu0 }
  0xfd   :  { %v193_v31 = vpop.f32.mrf.mxu0 }
  0xfe   :  { %v206_v33 = vmax.f32 %v193_v31, 0.0 }
  0xff   :  { %v195_v34 = vpop.f32.mrf.mxu0 }
 0x100   :  { %v209_v35 = vadd.f32 %v206_v33, %v205_v32 }
 0x101   :  { %v198_v36 = vpop.f32.mrf.mxu0 }
 0x102   :  { %v210_v37 = vrot.slane %v209_v35, 4  ;;  %v207_v42 = vmax.f32 %v198_v36, 0.0 }
 0x103   :  { %v200_v38 = vpop.f32.mrf.mxu0 }
 0x104   :  { %v211_v39 = vadd.f32 %v210_v37, %v209_v35 }
 0x105   :  { %v201_v40 = vpop.f32.mrf.mxu0 }
 0x106   :  { %v212_v41 = vrot.slane %v211_v39, 2  ;;  %v208_v43 = vmax.f32 %v201_v40, 0.0 }
 0x107   :  { %v203_v44 = vpop.f32.mrf.mxu0 }
 0x108   :  { %v213_v45 = vadd.f32 %v212_v41, %v211_v39  ;;  %v216_v46 = vadd.f32 %v208_v43, %v207_v42 }
 0x10a   :  { %v217_v47 = vrot.slane %v216_v46, 4  ;;  %v214_v48 = vrot.slane %v213_v45, 1 }
 0x10c   :  { %v218_v49 = vadd.f32 %v217_v47, %v216_v46  ;;  %v215_v51 = vadd.f32 %v214_v48, %v213_v45 }
 0x10e   :  { %v219_v50 = vrot.slane %v218_v49, 2  ;;  %v223_v54 = vpack.c.bf16 %v215_v51, %v215_v51 }
 0x110   :  { %v220_v52 = vadd.f32 %v219_v50, %v218_v49  ;;  %v243_v57 = vunpack.c.l.b16 %v223_v54 }
 0x112   :  { %v221_v53 = vrot.slane %v220_v52, 1 }
 0x114   :  { %v222_v55 = vadd.f32 %v221_v53, %v220_v52 }
 0x116   :  { %v224_v56 = vpack.c.bf16 %v222_v55, %v222_v55 }
 0x118   :  { %v244_v58 = vunpack.c.l.b16 %v224_v56 }
 0x11a   :  { %v246_v59 = vsel %vm245_vm3, %v244_v58, %v243_v57 }
 0x11b   :  { %v247_v60 = vpack.c.b16 %v246_v59, %v246_v59 }
 0x11d   :  { %440 = vmatmul.mubr.bf16.vlgmr.msra.gmra.mxu1 %v247_v60 }
 0x1dd   :  { %v331_v61 = vpop.f32.mrf.mxu1 }
 0x1de   :  { %v411_v62 = vmul.f32 -1.442695, %v331_v61 }
 0x1df   :  { %v441_v63 = vpop.f32.mrf.mxu1 }
 0x1e0   :  { %476 = vpow2.f32 %v411_v62 }
 0x1e1   :  { %v334_v0 = vpop.f32.mrf.mxu1 }
 0x1e3   :  { %v442_v1 = vpop.f32.mrf.mxu1 }
 0x1ed   :  { %v477_v2 = vpop.eup %476 }
 0x1ee   :  { %v340_v3 = vadd.f32 1.0, %v477_v2 }
 0x1f0   :  { %478 = vrcp.f32 %v340_v3 }
 0x1fd   :  { %v479_v4 = vpop.eup %478 }
 0x1fe   :  { %v343_v5 = vsub.f32 1.0, %v479_v4 }
 0x200   :  { %v345_v6 = vmul.f32 %v479_v4, %v343_v5  ;;  %v412_v18 = vadd.f32 -0.5, %v343_v5 }
 0x202   :  { %480 = vrsqrt.f32 %v345_v6  ;;  %vm348_vm4 = vcmp.eq.f32.partialorder %v345_v6, inf  ;;  %v351_v9 = vand.u32 2147483648, %v345_v6  ;;  %vm350_vm5 = vcmp.eq.f32.partialorder %v345_v6, 0.0 }
 0x203   :  { %482 = vtanh.f32 %v331_v61  ;;  %v361_v19 = vmul.f32 %v412_v18, %v412_v18 }
 0x20f   :  { %v481_v7 = vpop.eup %480 }
 0x210   :  { %v347_v8 = vmul.f32 %v481_v7, %v345_v6  ;;  %v483_v12 = vpop.eup %482 }
 0x212   :  { %v349_v10 = vsel %vm348_vm4, %v345_v6, %v347_v8 }
 0x213   :  { %v352_v11 = vsel %vm350_vm5, %v351_v9, %v349_v10 }
 0x214   :  { %354 = vrot.lane.b32.xlu0 %v352_v11, %s487_s2 }
 0x286   :  { %v355_v13 = vpop.permute.xlu0 %354 }
 0x287   :  { %v357_v14 = vmul.f32 %v483_v12, %v355_v13 }
 0x289   :  { %v359_v15 = vand.u32 2147483647, %v357_v14 }
 0x28b   :  { %v413_v16 = vadd.f32 -0.25, %v359_v15 }
 0x28d   :  { %v362_v17 = vmul.f32 %v413_v16, %v413_v16 }
 0x28f   :  { %364 = vrot.lane.b32.xlu0 %v362_v17, %s488_s8 }
 0x301   :  { %v365_v20 = vpop.permute.xlu0 %364 }
 0x302   :  { %v367_v21 = vadd.f32 %v365_v20, %v361_v19 }
 0x304   :  { %v368_v22 = vmul.f32 1e-06, %v367_v21 }
 0x306   :  { %v369_v23 = vadd.f32 1e-12, %v368_v22 }
 0x308   :  { %v370_v24 = vadd.f32 1e-06, %v369_v23 }
 0x30a   :  { %v371_v25 = vmax.f32 %v370_v24, 0.0 }
 0x30c   :  { %v373_v26 = vsel %vm372_vm6, %v331_v61, %v371_v25 }
 0x30d   :  { %v375_v27 = vsel %vm374_vm7, %v373_v26, 0.0 }
 0x30e   :  { %v377_v28 = vsel %vm376_vm8, %v375_v27, 0.0 }
 0x30f   :  { %378 = vst [vmem:[%s595_s3] sm:$0xff] %v377_v28 }

</bundles_post_ra>
